<compile_context>
chip_gen: v5e
topology: v5e:2x2
jax: 0.10.0
libtpu: 0.0.40
codegen_flags: <defaults>
</compile_context>

<pallas_src>
import numpy as np
import jax
import jax.numpy as jnp
from jax.experimental import pallas as pl
from jax.experimental.pallas import tpu as pltpu


# ----------------------------------------------------------------------------
# Deterministic parameter init (replicates WordLSTMCell.reset_parameters,
# including the reference's quirk that `success = True` is set unconditionally
# so retries never happen).
# ----------------------------------------------------------------------------
def orthonormal_initializer(output_size, input_size):
    I = np.eye(output_size)
    lr = 0.1
    eps = 0.05 / (output_size + input_size)
    success = False
    tries = 0
    Q = np.random.randn(input_size, output_size) / np.sqrt(output_size)
    while not success and tries < 10:
        Q = np.random.randn(input_size, output_size) / np.sqrt(output_size)
        for _ in range(100):
            QTQmI = Q.T.dot(Q) - I
            loss = np.sum(QTQmI ** 2 / 2)
            Q2 = Q ** 2
            Q -= lr * Q.dot(QTQmI) / (
                np.abs(Q2 + Q2.sum(axis=0, keepdims=True) + Q2.sum(axis=1, keepdims=True) - 1) + eps
            )
            if np.max(Q) > 1e6 or loss > 1e6 or (not np.isfinite(loss)):
                tries += 1
                lr /= 2
                break
        success = True
    if not success:
        Q = np.random.randn(input_size, output_size) / np.sqrt(output_size)
    return np.transpose(Q.astype(np.float32))


def make_word_lstm_params(input_size, hidden_size, seed=0):
    np.random.seed(seed)
    W = orthonormal_initializer(hidden_size, hidden_size + input_size)  # (H, H+D)
    W_h, W_x = W[:, :hidden_size], W[:, hidden_size:]                   # (H,H), (H,D)
    w_ih = np.concatenate([W_x] * 3, axis=0)  # (3H, D)  == linear_ih.weight
    w_hh = np.concatenate([W_h] * 3, axis=0)  # (3H, H)  == linear_hh.weight
    b_ih = np.zeros(3 * hidden_size, dtype=np.float32)
    b_hh = np.zeros(3 * hidden_size, dtype=np.float32)
    return (
        jnp.asarray(w_ih, jnp.float32),
        jnp.asarray(w_hh, jnp.float32),
        jnp.asarray(b_ih, jnp.float32),
        jnp.asarray(b_hh, jnp.float32),
    )


def _round_up(x, m):
    return (x + m - 1) // m * m


def pack_word_lstm_params(w_ih, w_hh, b_ih, b_hh):
    """One-time packing into gate-major, 128-lane-padded, bf16 MXU operands.

    Returns:
      wx_p: (3, D_pad, H_pad) bf16  -- per-gate W_ih^T
      wh_p: (3, H_pad, H_pad) bf16  -- per-gate W_hh^T
      b_p:  (3, 1,  H_pad)  f32     -- per-gate (b_ih + b_hh)
    """
    H = w_hh.shape[1]
    D = w_ih.shape[1]
    D_pad = _round_up(D, 128)
    H_pad = _round_up(H, 128)

    # PyTorch weights are gate-stacked rows: rows [g*H:(g+1)*H] belong to gate g.
    wx = jnp.transpose(jnp.asarray(w_ih, jnp.float32).reshape(3, H, D), (0, 2, 1))  # (3, D, H)
    wh = jnp.transpose(jnp.asarray(w_hh, jnp.float32).reshape(3, H, H), (0, 2, 1))  # (3, H, H)
    wx_p = jnp.pad(wx, ((0, 0), (0, D_pad - D), (0, H_pad - H))).astype(jnp.bfloat16)
    wh_p = jnp.pad(wh, ((0, 0), (0, H_pad - H), (0, H_pad - H))).astype(jnp.bfloat16)

    b = (jnp.asarray(b_ih, jnp.float32) + jnp.asarray(b_hh, jnp.float32)).reshape(3, 1, H)
    b_p = jnp.pad(b, ((0, 0), (0, 0), (0, H_pad - H)))
    return wx_p, wh_p, b_p


# ----------------------------------------------------------------------------
# Pallas kernel: per-gate bf16 MXU dots (f32 accumulation) + f32 gating
# ----------------------------------------------------------------------------
def word_lstm_cell_kernel(x_ref, h_ref, c_ref, wx_ref, wh_ref, b_ref, newc_ref):
    x = x_ref[...]   # (TB, D_pad) bf16
    h = h_ref[...]   # (TB, H_pad) bf16

    def pre_act(g):
        # v_g = x @ W_ih[g]^T + h @ W_hh[g]^T + b[g]   (f32 accumulation)
        return (jnp.dot(x, wx_ref[g], preferred_element_type=jnp.float32)
                + jnp.dot(h, wh_ref[g], preferred_element_type=jnp.float32)
                + b_ref[g])

    i_gate = jax.nn.sigmoid(pre_act(0))
    f_gate = jax.nn.sigmoid(pre_act(1) + 1.0)
    g_gate = jnp.tanh(pre_act(2))
    newc_ref[...] = f_gate * c_ref[...] + i_gate * g_gate


@jax.jit
def word_lstm_cell(x, h, c, wx_p, wh_p, b_p):
    """x:(B,D), h:(B,H), c:(B,H) -> new_c:(B,H) float32."""
    B, D = x.shape
    H = c.shape[1]
    D_pad = wx_p.shape[1]
    H_pad = wh_p.shape[1]

    # Hidden-column tile: multiple of 128 that divides H_pad; bounds per-tile
    # weight VMEM for large H (v7x) while keeping lane-dense stores.
    TN = 128
    for cand in (512, 256, 128):
        if H_pad % cand == 0:
            TN = cand
            break

    # Batch tile: multiple of 16 sublanes (bf16 packs 16x128/vreg). Pad the
    # batch only to a multiple of 16; pl.cdiv covers any final partial tile.
    B_pad = _round_up(B, 16)
    TB = min(B_pad, 256)
    grid = (pl.cdiv(B_pad, TB), H_pad // TN)

    xb = jnp.pad(x.astype(jnp.bfloat16), ((0, B_pad - B), (0, D_pad - D)))
    hb = jnp.pad(h.astype(jnp.bfloat16), ((0, B_pad - B), (0, H_pad - H)))
    cp = jnp.pad(c.astype(jnp.float32), ((0, B_pad - B), (0, H_pad - H)))

    # Scoped-VMEM budget: double-buffered blocks + headroom (defaults of
    # 16 MiB on v5e / 32 MiB on v6e+ are too small for resident weights at big H).
    block_bytes = (TB * D_pad * 2 + TB * H_pad * 2 + TB * TN * 4          # x, h, c
                   + 3 * D_pad * TN * 2 + 3 * H_pad * TN * 2 + 3 * TN * 4  # wx, wh, b
                   + TB * TN * 4)                                          # out
    vmem_limit = int(min(max(2 * block_bytes + (8 << 20), 32 << 20), 100 << 20))

    cost = pl.CostEstimate(
        flops=2 * B_pad * (D_pad + H_pad) * 3 * H_pad,
        transcendentals=3 * B_pad * H_pad,
        bytes_accessed=int(xb.size * 2 + hb.size * 2 + cp.size * 4
                           + wx_p.size * 2 + wh_p.size * 2 + b_p.size * 4
                           + B_pad * H_pad * 4),
    )

    new_c_pad = pl.pallas_call(
        word_lstm_cell_kernel,
        out_shape=jax.ShapeDtypeStruct((B_pad, H_pad), jnp.float32),
        grid=grid,
        in_specs=[
            pl.BlockSpec((TB, D_pad), lambda i, j: (i, 0)),         # x  (bf16)
            pl.BlockSpec((TB, H_pad), lambda i, j: (i, 0)),         # h  (bf16)
            pl.BlockSpec((TB, TN), lambda i, j: (i, j)),            # c  (f32)
            pl.BlockSpec((3, D_pad, TN), lambda i, j: (0, 0, j)),   # W_ih^T per gate
            pl.BlockSpec((3, H_pad, TN), lambda i, j: (0, 0, j)),   # W_hh^T per gate
            pl.BlockSpec((3, 1, TN), lambda i, j: (0, 0, j)),       # bias per gate
        ],
        out_specs=pl.BlockSpec((TB, TN), lambda i, j: (i, j)),
        compiler_params=pltpu.CompilerParams(
            dimension_semantics=("parallel", "parallel"),
            vmem_limit_bytes=vmem_limit),
        cost_estimate=cost,
    )(xb, hb, cp, wx_p, wh_p, b_p)

    return new_c_pad[:B, :H]


# ----------------------------------------------------------------------------
# Pure-JAX reference (mirrors the PyTorch forward)
# ----------------------------------------------------------------------------
def word_lstm_cell_ref(x, h, c, w_ih, w_hh, b_ih, b_hh, operand_dtype=jnp.float32):
    dt = operand_dtype
    prec = jax.lax.Precision.HIGHEST if dt == jnp.float32 else None
    v = (jnp.dot(x.astype(dt), w_ih.T.astype(dt),
                 preferred_element_type=jnp.float32, precision=prec) + b_ih
         + jnp.dot(h.astype(dt), w_hh.T.astype(dt),
                   preferred_element_type=jnp.float32, precision=prec) + b_hh)
    H = c.shape[1]
    i = jax.nn.sigmoid(v[:, :H])
    f = jax.nn.sigmoid(v[:, H:2 * H] + 1.0)
    g = jnp.tanh(v[:, 2 * H:])
    return f * c.astype(jnp.float32) + i * g


if __name__ == "__main__":
    input_size = 16
    hidden_size = 32
    batch = 2

    w_ih, w_hh, b_ih, b_hh = make_word_lstm_params(input_size, hidden_size, seed=0)
    wx_p, wh_p, b_p = pack_word_lstm_params(w_ih, w_hh, b_ih, b_hh)

    key = jax.random.PRNGKey(0)
    kx, kh, kc = jax.random.split(key, 3)
    x = jax.random.normal(kx, (batch, input_size), dtype=jnp.float32)
    h = jax.random.normal(kh, (batch, hidden_size), dtype=jnp.float32)
    c = jax.random.normal(kc, (batch, hidden_size), dtype=jnp.float32)

    new_c = jax.block_until_ready(word_lstm_cell(x, h, c, wx_p, wh_p, b_p))

    # Apples-to-apples reference (bf16 MXU operands, f32 accumulation) -> tight.
    ref_bf16 = word_lstm_cell_ref(x, h, c, w_ih, w_hh, b_ih, b_hh,
                                  operand_dtype=jnp.bfloat16)
    np.testing.assert_allclose(np.asarray(new_c), np.asarray(ref_bf16),
                               rtol=1e-4, atol=1e-4)

    # Full-f32 module semantics -> bounded only by bf16 operand rounding.
    ref_f32 = word_lstm_cell_ref(x, h, c, w_ih, w_hh, b_ih, b_hh,
                                 operand_dtype=jnp.float32)
    np.testing.assert_allclose(np.asarray(new_c), np.asarray(ref_f32),
                               rtol=2e-2, atol=2e-2)

    print("KERNEL_OK")
</pallas_src>

<mosaic_0001>
module attributes {stable_mosaic.version = 11 : i64} {
  func.func @word_lstm_cell_kernel(%arg0: i32, %arg1: i32, %arg2: memref<16x128xbf16, #tpu.memory_space<vmem>>, %arg3: memref<16x128xbf16, #tpu.memory_space<vmem>>, %arg4: memref<16x128xf32, #tpu.memory_space<vmem>>, %arg5: memref<3x128x128xbf16, #tpu.memory_space<vmem>>, %arg6: memref<3x128x128xbf16, #tpu.memory_space<vmem>>, %arg7: memref<3x1x128xf32, #tpu.memory_space<vmem>>, %arg8: memref<16x128xf32, #tpu.memory_space<vmem>>) attributes {dimension_semantics = [#tpu.dimension_semantics<parallel>, #tpu.dimension_semantics<parallel>], iteration_bounds = array<i64: 1, 1>, scalar_prefetch = 0 : i64, scratch_operands = 0 : i64, tpu.core_type = #tpu.core_type<tc>, window_params = [{transform_indices = @transform_0, window_bounds = array<i64: 16, 128>}, {transform_indices = @transform_1, window_bounds = array<i64: 16, 128>}, {transform_indices = @transform_2, window_bounds = array<i64: 16, 128>}, {transform_indices = @transform_3, window_bounds = array<i64: 3, 128, 128>}, {transform_indices = @transform_4, window_bounds = array<i64: 3, 128, 128>}, {transform_indices = @transform_5, window_bounds = array<i64: 3, 1, 128>}, {transform_indices = @transform_6, window_bounds = array<i64: 16, 128>}]} {
    %c0 = arith.constant 0 : index
    %c0_0 = arith.constant 0 : index
    %0 = vector.load %arg2[%c0, %c0_0] : memref<16x128xbf16, #tpu.memory_space<vmem>>, vector<16x128xbf16>
    %c0_1 = arith.constant 0 : index
    %c0_2 = arith.constant 0 : index
    %1 = vector.load %arg3[%c0_1, %c0_2] : memref<16x128xbf16, #tpu.memory_space<vmem>>, vector<16x128xbf16>
    %c0_3 = arith.constant 0 : index
    %c0_4 = arith.constant 0 : index
    %c0_5 = arith.constant 0 : index
    %2 = vector.load %arg5[%c0_3, %c0_4, %c0_5] : memref<3x128x128xbf16, #tpu.memory_space<vmem>>, vector<1x128x128xbf16>
    %3 = vector.shape_cast %2 : vector<1x128x128xbf16> to vector<128x128xbf16>
    %cst = arith.constant dense<0.000000e+00> : vector<16x128xf32>
    %4 = tpu.matmul %0, %3, %cst {dimension_numbers = #tpu.dot_dimension_numbers<[1], [0], [0], [1], [0, 0, 1, 1], [], []>} : vector<16x128xbf16>, vector<128x128xbf16>, vector<16x128xf32> -> vector<16x128xf32>
    %c0_6 = arith.constant 0 : index
    %c0_7 = arith.constant 0 : index
    %c0_8 = arith.constant 0 : index
    %5 = vector.load %arg6[%c0_6, %c0_7, %c0_8] : memref<3x128x128xbf16, #tpu.memory_space<vmem>>, vector<1x128x128xbf16>
    %6 = vector.shape_cast %5 : vector<1x128x128xbf16> to vector<128x128xbf16>
    %cst_9 = arith.constant dense<0.000000e+00> : vector<16x128xf32>
    %7 = tpu.matmul %1, %6, %cst_9 {dimension_numbers = #tpu.dot_dimension_numbers<[1], [0], [0], [1], [0, 0, 1, 1], [], []>} : vector<16x128xbf16>, vector<128x128xbf16>, vector<16x128xf32> -> vector<16x128xf32>
    %8 = arith.addf %4, %7 : vector<16x128xf32>
    %c0_10 = arith.constant 0 : index
    %c0_11 = arith.constant 0 : index
    %c0_12 = arith.constant 0 : index
    %9 = vector.load %arg7[%c0_10, %c0_11, %c0_12] : memref<3x1x128xf32, #tpu.memory_space<vmem>>, vector<1x1x128xf32>
    %10 = vector.shape_cast %9 : vector<1x1x128xf32> to vector<1x128xf32>
    %11 = vector.broadcast %10 : vector<1x128xf32> to vector<16x128xf32>
    %12 = arith.addf %8, %11 : vector<16x128xf32>
    %13 = arith.negf %12 : vector<16x128xf32>
    %14 = math.exp %13 : vector<16x128xf32>
    %cst_13 = arith.constant 1.000000e+00 : f32
    %15 = vector.broadcast %cst_13 : f32 to vector<16x128xf32>
    %16 = arith.addf %15, %14 : vector<16x128xf32>
    %17 = arith.divf %15, %16 : vector<16x128xf32>
    %c1 = arith.constant 1 : index
    %c0_14 = arith.constant 0 : index
    %c0_15 = arith.constant 0 : index
    %18 = vector.load %arg5[%c1, %c0_14, %c0_15] : memref<3x128x128xbf16, #tpu.memory_space<vmem>>, vector<1x128x128xbf16>
    %19 = vector.shape_cast %18 : vector<1x128x128xbf16> to vector<128x128xbf16>
    %cst_16 = arith.constant dense<0.000000e+00> : vector<16x128xf32>
    %20 = tpu.matmul %0, %19, %cst_16 {dimension_numbers = #tpu.dot_dimension_numbers<[1], [0], [0], [1], [0, 0, 1, 1], [], []>} : vector<16x128xbf16>, vector<128x128xbf16>, vector<16x128xf32> -> vector<16x128xf32>
    %c1_17 = arith.constant 1 : index
    %c0_18 = arith.constant 0 : index
    %c0_19 = arith.constant 0 : index
    %21 = vector.load %arg6[%c1_17, %c0_18, %c0_19] : memref<3x128x128xbf16, #tpu.memory_space<vmem>>, vector<1x128x128xbf16>
    %22 = vector.shape_cast %21 : vector<1x128x128xbf16> to vector<128x128xbf16>
    %cst_20 = arith.constant dense<0.000000e+00> : vector<16x128xf32>
    %23 = tpu.matmul %1, %22, %cst_20 {dimension_numbers = #tpu.dot_dimension_numbers<[1], [0], [0], [1], [0, 0, 1, 1], [], []>} : vector<16x128xbf16>, vector<128x128xbf16>, vector<16x128xf32> -> vector<16x128xf32>
    %24 = arith.addf %20, %23 : vector<16x128xf32>
    %c1_21 = arith.constant 1 : index
    %c0_22 = arith.constant 0 : index
    %c0_23 = arith.constant 0 : index
    %25 = vector.load %arg7[%c1_21, %c0_22, %c0_23] : memref<3x1x128xf32, #tpu.memory_space<vmem>>, vector<1x1x128xf32>
    %26 = vector.shape_cast %25 : vector<1x1x128xf32> to vector<1x128xf32>
    %27 = vector.broadcast %26 : vector<1x128xf32> to vector<16x128xf32>
    %28 = arith.addf %24, %27 : vector<16x128xf32>
    %cst_24 = arith.constant 1.000000e+00 : f32
    %29 = vector.broadcast %cst_24 : f32 to vector<16x128xf32>
    %30 = arith.addf %28, %29 : vector<16x128xf32>
    %31 = arith.negf %30 : vector<16x128xf32>
    %32 = math.exp %31 : vector<16x128xf32>
    %cst_25 = arith.constant 1.000000e+00 : f32
    %33 = vector.broadcast %cst_25 : f32 to vector<16x128xf32>
    %34 = arith.addf %33, %32 : vector<16x128xf32>
    %35 = arith.divf %33, %34 : vector<16x128xf32>
    %c2 = arith.constant 2 : index
    %c0_26 = arith.constant 0 : index
    %c0_27 = arith.constant 0 : index
    %36 = vector.load %arg5[%c2, %c0_26, %c0_27] : memref<3x128x128xbf16, #tpu.memory_space<vmem>>, vector<1x128x128xbf16>
    %37 = vector.shape_cast %36 : vector<1x128x128xbf16> to vector<128x128xbf16>
    %cst_28 = arith.constant dense<0.000000e+00> : vector<16x128xf32>
    %38 = tpu.matmul %0, %37, %cst_28 {dimension_numbers = #tpu.dot_dimension_numbers<[1], [0], [0], [1], [0, 0, 1, 1], [], []>} : vector<16x128xbf16>, vector<128x128xbf16>, vector<16x128xf32> -> vector<16x128xf32>
    %c2_29 = arith.constant 2 : index
    %c0_30 = arith.constant 0 : index
    %c0_31 = arith.constant 0 : index
    %39 = vector.load %arg6[%c2_29, %c0_30, %c0_31] : memref<3x128x128xbf16, #tpu.memory_space<vmem>>, vector<1x128x128xbf16>
    %40 = vector.shape_cast %39 : vector<1x128x128xbf16> to vector<128x128xbf16>
    %cst_32 = arith.constant dense<0.000000e+00> : vector<16x128xf32>
    %41 = tpu.matmul %1, %40, %cst_32 {dimension_numbers = #tpu.dot_dimension_numbers<[1], [0], [0], [1], [0, 0, 1, 1], [], []>} : vector<16x128xbf16>, vector<128x128xbf16>, vector<16x128xf32> -> vector<16x128xf32>
    %42 = arith.addf %38, %41 : vector<16x128xf32>
    %c2_33 = arith.constant 2 : index
    %c0_34 = arith.constant 0 : index
    %c0_35 = arith.constant 0 : index
    %43 = vector.load %arg7[%c2_33, %c0_34, %c0_35] : memref<3x1x128xf32, #tpu.memory_space<vmem>>, vector<1x1x128xf32>
    %44 = vector.shape_cast %43 : vector<1x1x128xf32> to vector<1x128xf32>
    %45 = vector.broadcast %44 : vector<1x128xf32> to vector<16x128xf32>
    %46 = arith.addf %42, %45 : vector<16x128xf32>
    %47 = math.tanh %46 : vector<16x128xf32>
    %c0_36 = arith.constant 0 : index
    %c0_37 = arith.constant 0 : index
    %48 = vector.load %arg4[%c0_36, %c0_37] : memref<16x128xf32, #tpu.memory_space<vmem>>, vector<16x128xf32>
    %49 = arith.mulf %35, %48 : vector<16x128xf32>
    %50 = arith.mulf %17, %47 : vector<16x128xf32>
    %51 = arith.addf %49, %50 : vector<16x128xf32>
    %c0_38 = arith.constant 0 : index
    %c0_39 = arith.constant 0 : index
    %52 = vector.load %arg8[%c0_38, %c0_39] : memref<16x128xf32, #tpu.memory_space<vmem>>, vector<16x128xf32>
    tpu.vector_store %arg8[%c0_38, %c0_39], %51 {strides = array<i32>} : memref<16x128xf32, #tpu.memory_space<vmem>>, vector<16x128xf32>,
    return
  }
  func.func @transform_0(%arg0: i32, %arg1: i32) -> (i32, i32) {
    %c0_i32 = arith.constant 0 : i32
    %c0_i32_0 = arith.constant 0 : i32
    return %arg0, %c0_i32 : i32, i32
  }
  func.func @transform_1(%arg0: i32, %arg1: i32) -> (i32, i32) {
    %c0_i32 = arith.constant 0 : i32
    %c0_i32_0 = arith.constant 0 : i32
    return %arg0, %c0_i32 : i32, i32
  }
  func.func @transform_2(%arg0: i32, %arg1: i32) -> (i32, i32) {
    %c0_i32 = arith.constant 0 : i32
    return %arg0, %arg1 : i32, i32
  }
  func.func @transform_3(%arg0: i32, %arg1: i32) -> (i32, i32, i32) {
    %c0_i32 = arith.constant 0 : i32
    %c0_i32_0 = arith.constant 0 : i32
    %c0_i32_1 = arith.constant 0 : i32
    return %c0_i32, %c0_i32_0, %arg1 : i32, i32, i32
  }
  func.func @transform_4(%arg0: i32, %arg1: i32) -> (i32, i32, i32) {
    %c0_i32 = arith.constant 0 : i32
    %c0_i32_0 = arith.constant 0 : i32
    %c0_i32_1 = arith.constant 0 : i32
    return %c0_i32, %c0_i32_0, %arg1 : i32, i32, i32
  }
  func.func @transform_5(%arg0: i32, %arg1: i32) -> (i32, i32, i32) {
    %c0_i32 = arith.constant 0 : i32
    %c0_i32_0 = arith.constant 0 : i32
    %c0_i32_1 = arith.constant 0 : i32
    return %c0_i32, %c0_i32_0, %arg1 : i32, i32, i32
  }
  func.func @transform_6(%arg0: i32, %arg1: i32) -> (i32, i32) {
    %c0_i32 = arith.constant 0 : i32
    return %arg0, %arg1 : i32, i32
  }
}

</mosaic_0001>

<bundles_post_ra>
// kernel: word_lstm_cell.1
= control target key start
LH: loop header
LB: loop body
LE: loop exit
PB: predicated region body
PF: predicated region fallthrough
CT: control target
= control target key end

     0   :  { %11 = vsyncpa [#allocation3], 0  ;;  %s1093_s0 = inlined_call_operand.vmem [shape: bf16[16,128], index: 0, kind: input, shape index: {}]   ;;  %s1094_s1 = inlined_call_operand.vmem [shape: bf16[16,128], index: 1, kind: input, shape index: {}]   ;;  %s1095_s2 = inlined_call_operand.vmem [shape: f32[16,128], index: 2, kind: input, shape index: {}]   ;;  %s1096_s3 = inlined_call_operand.hbm [shape: bf16[3,128,128], index: 3, kind: input, shape index: {}]   ;;  %s1097_s4 = inlined_call_operand.hbm [shape: bf16[3,128,128], index: 4, kind: input, shape index: {}]   ;;  %s1098_s5 = inlined_call_operand.vmem [shape: f32[3,1,128], index: 5, kind: input, shape index: {}]   ;;  %s1099_s6 = inlined_call_operand.vmem [shape: f32[16,128], index: 6, kind: output, shape index: {}]  }
   0x1   :  { %s23_s23 = sshll.u32 %s1096_s3, 4  ;;  %s24_s23 = int_to_ptr.hbm [resolvable:$true] %s23_s23 }
   0x2   :  { %12 = vsyncpa [#allocation5], 0  ;;  %s994_s24 = smov [#allocation2]   ;;  %s36_s28 = sshll.u32 %s1097_s4, 4  ;;  %s37_s28 = int_to_ptr.hbm [resolvable:$true] %s36_s28 }
   0x3   :  { %s25_s25 = sshll.u32 %s994_s24, 4  ;;  %s995_s29 = smov 64   ;;  %s26_s25 = int_to_ptr.vmem [resolvable:$true] %s25_s25 }
   0x4   :  { %s996_s30 = smov 4   ;;  %s997_s7 = smov [#allocation4]  }
   0x5   :  { %31 = dma.hbm_to_vmem [thread:$0]  %s24_s23, 3072, %s26_s25, [#allocation3], %s995_s29, %s995_s29, %s996_s30  }
   0x6   :  { %s38_s8 = sshll.u32 %s997_s7, 4  ;;  %s39_s8 = int_to_ptr.vmem [resolvable:$true] %s38_s8 }
   0x7   :  { %44 = dma.hbm_to_vmem [thread:$0]  %s37_s28, 3072, %s39_s8, [#allocation5], %s995_s29, %s995_s29, %s996_s30  }
   0x8   :  { %990 = dma.done.wait [#allocation3], 3072  }
   0x9   :  { %991 = vsyncadd [#allocation3], 4294964224 }
   0xa   :  { %992 = dma.done.wait [#allocation5], 3072  }
   0xb   :  { %993 = vsyncadd [#allocation5], 4294964224  ;;  %v882_v0 = vld [vmem:[#allocation4 + $0x38] sm:$0xff]  ;;  %v881_v4 = vld [vmem:[#allocation4 + $0x30] sm:$0xff] }
   0xc   :  { %v874_v1 = vld [vmem:[#allocation2 + $0x38] sm:$0xff]  ;;  %145 = vmatpush.bf16.msra.mxu0 %v882_v0  ;;  %v873_v5 = vld [vmem:[#allocation2 + $0x30] sm:$0xff]  ;;  %v880_v8 = vld [vmem:[#allocation4 + $0x28] sm:$0xff] }
   0xd   :  { %v898_v2 = vld [vmem:[#allocation4 + $0x78] sm:$0xff]  ;;  %213 = vmatpush.bf16.msra.mxu1 %v874_v1  ;;  %v897_v6 = vld [vmem:[#allocation4 + $0x70] sm:$0xff]  ;;  %v872_v9 = vld [vmem:[#allocation2 + $0x28] sm:$0xff] }
   0xe   :  { %v890_v3 = vld [vmem:[#allocation2 + $0x78] sm:$0xff]  ;;  %353 = vmatpush.bf16.msra.mxu2 %v898_v2  ;;  %v889_v7 = vld [vmem:[#allocation2 + $0x70] sm:$0xff]  ;;  %v896_v10 = vld [vmem:[#allocation4 + $0x68] sm:$0xff] }
   0xf   :  { %415 = vmatpush.bf16.msra.mxu3 %v890_v3  ;;  %v888_v11 = vld [vmem:[#allocation2 + $0x68] sm:$0xff]  ;;  %v879_v12 = vld [vmem:[#allocation4 + $0x20] sm:$0xff]  ;;  %v878_v16 = vld [vmem:[#allocation4 + $0x18] sm:$0xff] }
  0x10   :  { %146 = vmatpush.bf16.msra.mxu0 %v881_v4  ;;  %v871_v13 = vld [vmem:[#allocation2 + $0x20] sm:$0xff]  ;;  %v870_v17 = vld [vmem:[#allocation2 + $0x18] sm:$0xff]  ;;  %v877_v20 = vld [vmem:[#allocation4 + $0x10] sm:$0xff] }
  0x11   :  { %214 = vmatpush.bf16.msra.mxu1 %v873_v5  ;;  %v895_v14 = vld [vmem:[#allocation4 + $0x60] sm:$0xff]  ;;  %v894_v18 = vld [vmem:[#allocation4 + $0x58] sm:$0xff]  ;;  %v869_v21 = vld [vmem:[#allocation2 + $0x10] sm:$0xff] }
  0x12   :  { %354 = vmatpush.bf16.msra.mxu2 %v897_v6  ;;  %v887_v15 = vld [vmem:[#allocation2 + $0x60] sm:$0xff]  ;;  %v886_v19 = vld [vmem:[#allocation2 + $0x58] sm:$0xff]  ;;  %v893_v22 = vld [vmem:[#allocation4 + $0x50] sm:$0xff] }
  0x13   :  { %416 = vmatpush.bf16.msra.mxu3 %v889_v7  ;;  %v885_v23 = vld [vmem:[#allocation2 + $0x50] sm:$0xff]  ;;  %v876_v24 = vld [vmem:[#allocation4 + $0x8] sm:$0xff]  ;;  %v875_v28 = vld [vmem:[#allocation4] sm:$0xff] }
  0x14   :  { %147 = vmatpush.bf16.msra.mxu0 %v880_v8  ;;  %v868_v25 = vld [vmem:[#allocation2 + $0x8] sm:$0xff]  ;;  %v867_v29 = vld [vmem:[#allocation2] sm:$0xff]  ;;  %v914_v32 = vld [vmem:[#allocation4 + $0xb8] sm:$0xff] }
  0x15   :  { %215 = vmatpush.bf16.msra.mxu1 %v872_v9  ;;  %v892_v26 = vld [vmem:[#allocation4 + $0x48] sm:$0xff]  ;;  %v891_v30 = vld [vmem:[#allocation4 + $0x40] sm:$0xff]  ;;  %v906_v33 = vld [vmem:[#allocation2 + $0xb8] sm:$0xff] }
  0x16   :  { %355 = vmatpush.bf16.msra.mxu2 %v896_v10  ;;  %v884_v27 = vld [vmem:[#allocation2 + $0x48] sm:$0xff]  ;;  %v883_v31 = vld [vmem:[#allocation2 + $0x40] sm:$0xff]  ;;  %v913_v36 = vld [vmem:[#allocation4 + $0xb0] sm:$0xff] }
  0x17   :  { %417 = vmatpush.bf16.msra.mxu3 %v888_v11  ;;  %v866_v34 = vld [vmem:[%s1094_s1] sm:$0xff]  ;;  %v905_v37 = vld [vmem:[#allocation2 + $0xb0] sm:$0xff]  ;;  %v912_v38 = vld [vmem:[#allocation4 + $0xa8] sm:$0xff] }
  0x18   :  { %148 = vmatpush.bf16.msra.mxu0 %v879_v12  ;;  %v865_v35 = vld [vmem:[%s1093_s0] sm:$0xff]  ;;  %v904_v39 = vld [vmem:[#allocation2 + $0xa8] sm:$0xff]  ;;  %v910_v42 = vld [vmem:[#allocation4 + $0x98] sm:$0xff] }
  0x19   :  { %216 = vmatpush.bf16.msra.mxu1 %v871_v13  ;;  %v911_v40 = vld [vmem:[#allocation4 + $0xa0] sm:$0xff]  ;;  %v902_v43 = vld [vmem:[#allocation2 + $0x98] sm:$0xff]  ;;  %v909_v44 = vld [vmem:[#allocation4 + $0x90] sm:$0xff] }
  0x1a   :  { %356 = vmatpush.bf16.msra.mxu2 %v895_v14  ;;  %v903_v41 = vld [vmem:[#allocation2 + $0xa0] sm:$0xff]  ;;  %v901_v45 = vld [vmem:[#allocation2 + $0x90] sm:$0xff]  ;;  %v908_v46 = vld [vmem:[#allocation4 + $0x88] sm:$0xff] }
  0x1b   :  { %418 = vmatpush.bf16.msra.mxu3 %v887_v15  ;;  %v900_v47 = vld [vmem:[#allocation2 + $0x88] sm:$0xff]  ;;  %v907_v48 = vld [vmem:[#allocation4 + $0x80] sm:$0xff] }
  0x1c   :  { %149 = vmatpush.bf16.msra.mxu0 %v878_v16  ;;  %v899_v49 = vld [vmem:[#allocation2 + $0x80] sm:$0xff] }
  0x1d   :  { %217 = vmatpush.bf16.msra.mxu1 %v870_v17  ;;  %v919_v50 = vld [vmem:[%s1098_s5] ss:$0 sm:$0xff]  ;;  %v920_v56 = vld [vmem:[%s1098_s5 + $0x1] ss:$0 sm:$0xff] }
  0x1e   :  { %357 = vmatpush.bf16.msra.mxu2 %v894_v18 }
  0x1f   :  { %419 = vmatpush.bf16.msra.mxu3 %v886_v19  ;;  %v921_v19 = vld [vmem:[%s1098_s5 + $0x2] ss:$0 sm:$0xff] }
  0x20   :  { %150 = vmatpush.bf16.msra.mxu0 %v877_v20 }
  0x21   :  { %218 = vmatpush.bf16.msra.mxu1 %v869_v21 }
  0x22   :  { %358 = vmatpush.bf16.msra.mxu2 %v893_v22 }
  0x23   :  { %420 = vmatpush.bf16.msra.mxu3 %v885_v23 }
  0x24   :  { %151 = vmatpush.bf16.msra.mxu0 %v876_v24 }
  0x25   :  { %219 = vmatpush.bf16.msra.mxu1 %v868_v25 }
  0x26   :  { %359 = vmatpush.bf16.msra.mxu2 %v892_v26 }
  0x27   :  { %421 = vmatpush.bf16.msra.mxu3 %v884_v27 }
  0x28   :  { %152 = vmatpush.bf16.msra.mxu0 %v875_v28 }
  0x29   :  { %220 = vmatpush.bf16.msra.mxu1 %v867_v29 }
  0x2a   :  { %360 = vmatpush.bf16.msra.mxu2 %v891_v30 }
  0x2b   :  { %422 = vmatpush.bf16.msra.mxu3 %v883_v31  ;;  %153 = vmatmul.bf16.vlgmr.msra.gmra.mxu0 %v866_v34 }
  0x2c   :  { %558 = vmatpush.bf16.msrb.mxu0 %v914_v32  ;;  %221 = vmatmul.bf16.vlgmr.msra.gmra.mxu1 %v865_v35 }
  0x2d   :  { %620 = vmatpush.bf16.msrb.mxu1 %v906_v33  ;;  %361 = vmatmul.bf16.vlgmr.msra.gmra.mxu2 %v866_v34 }
  0x2e   :  { %423 = vmatmul.bf16.vlgmr.msra.gmra.mxu3 %v865_v35 }
  0x30   :  { %559 = vmatpush.bf16.msrb.mxu0 %v913_v36 }
  0x31   :  { %621 = vmatpush.bf16.msrb.mxu1 %v905_v37 }
  0x34   :  { %560 = vmatpush.bf16.msrb.mxu0 %v912_v38 }
  0x35   :  { %622 = vmatpush.bf16.msrb.mxu1 %v904_v39 }
  0x38   :  { %561 = vmatpush.bf16.msrb.mxu0 %v911_v40 }
  0x39   :  { %623 = vmatpush.bf16.msrb.mxu1 %v903_v41 }
  0x3c   :  { %562 = vmatpush.bf16.msrb.mxu0 %v910_v42 }
  0x3d   :  { %624 = vmatpush.bf16.msrb.mxu1 %v902_v43 }
  0x40   :  { %563 = vmatpush.bf16.msrb.mxu0 %v909_v44 }
  0x41   :  { %625 = vmatpush.bf16.msrb.mxu1 %v901_v45 }
  0x44   :  { %564 = vmatpush.bf16.msrb.mxu0 %v908_v46 }
  0x45   :  { %626 = vmatpush.bf16.msrb.mxu1 %v900_v47 }
  0x48   :  { %565 = vmatpush.bf16.msrb.mxu0 %v907_v48 }
  0x49   :  { %627 = vmatpush.bf16.msrb.mxu1 %v899_v49  ;;  %v643_v49 = vld [vmem:[%s1095_s2] sm:$0xff] }
  0x4b   :  { %566 = vmatmul.bf16.vlgmr.msrb.gmra.mxu0 %v866_v34 }
  0x4c   :  { %628 = vmatmul.bf16.vlgmr.msrb.gmra.mxu1 %v865_v35 }
  0xa8   :  { %v154_v51 = vpop.f32.mrf.mxu0 }
  0xa9   :  { %v222_v52 = vpop.f32.mrf.mxu1 }
  0xaa   :  { %v223_v53 = vadd.f32 %v222_v52, %v154_v51 }
  0xac   :  { %v231_v54 = vadd.f32 %v919_v50, %v223_v53 }
  0xae   :  { %v731_v55 = vmul.f32 -1.442695, %v231_v54 }
  0xb0   :  { %922 = vpow2.f32 %v731_v55  ;;  %v362_v57 = vpop.f32.mrf.mxu2  ;;  %v156_v60 = vpop.f32.mrf.mxu0 }
  0xb1   :  { %v424_v58 = vpop.f32.mrf.mxu3  ;;  %v224_v61 = vpop.f32.mrf.mxu1 }
  0xb2   :  { %v425_v59 = vadd.f32 %v424_v58, %v362_v57  ;;  %v225_v62 = vadd.f32 %v224_v61, %v156_v60 }
  0xb4   :  { %v434_v63 = vadd.f32 %v920_v56, %v425_v59  ;;  %v232_v0 = vadd.f32 %v919_v50, %v225_v62 }
  0xb6   :  { %v436_v1 = vadd.f32 1.0, %v434_v63  ;;  %v923_v2 = vpop.eup %922  ;;  %v732_v3 = vmul.f32 -1.442695, %v232_v0 }
  0xb7   :  { %v239_v4 = vadd.f32 1.0, %v923_v2 }
  0xb8   :  { %v798_v5 = vmul.f32 -1.442695, %v436_v1  ;;  %924 = vpow2.f32 %v732_v3  ;;  %v364_v6 = vpop.f32.mrf.mxu2 }
  0xb9   :  { %v426_v7 = vpop.f32.mrf.mxu3  ;;  %926 = vrcp.f32 %v239_v4  ;;  %vm246_vm0 = vweird.f32 %v239_v4  ;;  %v252_v34 = vand.u32 2147483648, %v239_v4  ;;  %v250_v36 = vand.u32 2147483647, %v239_v4 }
  0xba   :  { %v427_v8 = vadd.f32 %v426_v7, %v364_v6  ;;  %928 = vpow2.f32 %v798_v5  ;;  %v644_v6 = vld [vmem:[%s1095_s2 + $0x8] sm:$0xff] }
  0xbb   :  { %v253_v44 = vor.u32 1.1754944e-38, %v252_v34  ;;  %vm251_vm6 = vcmp.eq.f32.partialorder %v250_v36, 8.507059e+37 }
  0xbc   :  { %v435_v9 = vadd.f32 %v920_v56, %v427_v8 }
  0xbe   :  { %v437_v10 = vadd.f32 1.0, %v435_v9  ;;  %v925_v11 = vpop.eup %924 }
  0xbf   :  { %v927_v12 = vpop.eup %926  ;;  %v1051_v13 = vadd.f32 1.0, %v925_v11 }
  0xc0   :  { %v799_v14 = vmul.f32 -1.442695, %v437_v10  ;;  %v929_v15 = vpop.eup %928  ;;  %v242_v16 = vmul.f32 %v927_v12, %v239_v4  ;;  %vm247_vm1 = vweird.f32 %v927_v12 }
  0xc1   :  { %v444_v17 = vadd.f32 1.0, %v929_v15  ;;  %930 = vrcp.f32 %v1051_v13  ;;  %vm1064_vm3 = vmor %vm246_vm0, %vm247_vm1  ;;  %v267_v60 = vand.u32 2147483648, %v1051_v13  ;;  %vm261_vm9 = vweird.f32 %v1051_v13 }
  0xc2   :  { %932 = vpow2.f32 %v799_v14  ;;  %v243_v18 = vsub.f32 1.0, %v242_v16  ;;  %v265_v62 = vand.u32 2147483647, %v1051_v13 }
  0xc3   :  { %934 = vrcp.f32 %v444_v17  ;;  %v457_v35 = vand.u32 2147483648, %v444_v17  ;;  %v455_v37 = vand.u32 2147483647, %v444_v17  ;;  %vm451_vm4 = vweird.f32 %v444_v17 }
  0xc4   :  { %v244_v22 = vmul.f32 %v927_v12, %v243_v18  ;;  %v268_v3 = vor.u32 1.1754944e-38, %v267_v60  ;;  %vm266_vm14 = vcmp.eq.f32.partialorder %v265_v62, 8.507059e+37 }
  0xc5   :  { %v458_v48 = vor.u32 1.1754944e-38, %v457_v35  ;;  %vm456_vm7 = vcmp.eq.f32.partialorder %v455_v37, 8.507059e+37 }
  0xc6   :  { %v245_v32 = vadd.f32 %v927_v12, %v244_v22 }
  0xc7   :  { %v1057_v20 = vpop.eup %930 }
  0xc8   :  { %v567_v21 = vpop.f32.mrf.mxu0  ;;  %v933_v24 = vpop.eup %932  ;;  %v257_v25 = vmul.f32 %v1057_v20, %v1051_v13  ;;  %v249_v40 = vsel %vm1064_vm3, %v927_v12, %v245_v32  ;;  %vm262_vm8 = vweird.f32 %v1057_v20 }
  0xc9   :  { %v629_v23 = vpop.f32.mrf.mxu1  ;;  %v935_v27 = vpop.eup %934  ;;  %v1061_v28 = vadd.f32 1.0, %v933_v24  ;;  %v254_v52 = vsel %vm251_vm6, %v253_v44, %v249_v40  ;;  %vm263_vm11 = vmor %vm261_vm9, %vm262_vm8 }
  0xca   :  { %v630_v26 = vadd.f32 %v629_v23, %v567_v21  ;;  %v447_v29 = vmul.f32 %v935_v27, %v444_v17  ;;  %v258_v31 = vsub.f32 1.0, %v257_v25  ;;  %vm452_vm2 = vweird.f32 %v935_v27 }
  0xcb   :  { %936 = vrcp.f32 %v1061_v28  ;;  %vm453_vm5 = vmor %vm451_vm4, %vm452_vm2  ;;  %v472_v61 = vand.u32 2147483648, %v1061_v28  ;;  %v470_v1 = vand.u32 2147483647, %v1061_v28  ;;  %vm466_vm12 = vweird.f32 %v1061_v28 }
  0xcc   :  { %v639_v30 = vadd.f32 %v921_v19, %v630_v26  ;;  %v448_v33 = vsub.f32 1.0, %v447_v29  ;;  %v259_v42 = vmul.f32 %v1057_v20, %v258_v31 }
  0xcd   :  { %v473_v5 = vor.u32 1.1754944e-38, %v472_v61  ;;  %vm471_vm15 = vcmp.eq.f32.partialorder %v470_v1, 8.507059e+37 }
  0xce   :  { %938 = vtanh.f32 %v639_v30  ;;  %v449_v38 = vmul.f32 %v935_v27, %v448_v33  ;;  %v260_v57 = vadd.f32 %v1057_v20, %v259_v42 }
  0xd0   :  { %v569_v41 = vpop.f32.mrf.mxu0  ;;  %v450_v45 = vadd.f32 %v935_v27, %v449_v38  ;;  %v264_v2 = vsel %vm263_vm11, %v1057_v20, %v260_v57 }
  0xd1   :  { %v631_v43 = vpop.f32.mrf.mxu1  ;;  %v937_v47 = vpop.eup %936  ;;  %v269_v8 = vsel %vm266_vm14, %v268_v3, %v264_v2 }
  0xd2   :  { %v632_v46 = vadd.f32 %v631_v43, %v569_v41  ;;  %v462_v51 = vmul.f32 %v937_v47, %v1061_v28  ;;  %v454_v53 = vsel %vm453_vm5, %v935_v27, %v450_v45  ;;  %vm467_vm10 = vweird.f32 %v937_v47 }
  0xd3   :  { %v459_v55 = vsel %vm456_vm7, %v458_v48, %v454_v53  ;;  %vm468_vm13 = vmor %vm466_vm12, %vm467_vm10 }
  0xd4   :  { %v939_v50 = vpop.eup %938  ;;  %v640_v54 = vadd.f32 %v921_v19, %v632_v46  ;;  %v463_v58 = vsub.f32 1.0, %v462_v51  ;;  %v645_v59 = vmul.f32 %v643_v49, %v459_v55 }
  0xd5   :  { %v647_v56 = vmul.f32 %v939_v50, %v254_v52 }
  0xd6   :  { %940 = vtanh.f32 %v640_v54  ;;  %v464_v63 = vmul.f32 %v937_v47, %v463_v58 }
  0xd7   :  { %v649_v0 = vadd.f32 %v647_v56, %v645_v59 }
  0xd8   :  { %v465_v4 = vadd.f32 %v937_v47, %v464_v63 }
  0xd9   :  { %651 = vst [vmem:[%s1099_s6] sm:$0xff] %v649_v0 }
  0xda   :  { %v469_v9 = vsel %vm468_vm13, %v937_v47, %v465_v4 }
  0xdb   :  { %v474_v10 = vsel %vm471_vm15, %v473_v5, %v469_v9 }
  0xdc   :  { %v941_v7 = vpop.eup %940  ;;  %v646_v12 = vmul.f32 %v644_v6, %v474_v10 }
  0xdd   :  { %v648_v11 = vmul.f32 %v941_v7, %v269_v8 }
  0xdf   :  { %v650_v13 = vadd.f32 %v648_v11, %v646_v12 }
  0xe1   :  { %652 = vst [vmem:[%s1099_s6 + $0x8] sm:$0xff] %v650_v13 }
  0xe2   :  { %657 = vsyncpa [#allocation3], 1 }
  0xe3   :  { %658 = vsyncpa [#allocation5], 1 }

</bundles_post_ra>
